<compile_context>
chip_gen: v6e
topology: v6e:2x2x1
jax: 0.10.0
libtpu: 0.0.40
codegen_flags: <defaults>
</compile_context>

<pallas_src>
import functools

import jax
import jax.numpy as jnp
from jax.experimental import pallas as pl
from jax.experimental.pallas import tpu as pltpu

_LANE = 128


def _round_up(x, m):
    return (x + m - 1) // m * m


def _cdiv(a, b):
    return -(-a // b)


def _sublane(dtype):
    # Rows packed per vreg sublane group: 8 (f32), 16 (bf16), 32 (int8/fp8).
    return max(8, 32 // jnp.dtype(dtype).itemsize)


def _vmem_capacity_bytes():
    try:
        return int(pltpu.get_tpu_info().vmem_capacity_bytes)
    except Exception:
        return 64 * 2**20  # conservative fallback: fits every generation


def _working_set_bytes(tm, th, dim, w_isz, x_isz):
    weights = 2 * (2 * dim * th + th * dim) * w_isz   # double-buffered wgu + wd
    xio = 2 * 2 * tm * dim * x_isz                    # double-buffered x + out tiles
    acc = tm * dim * 4                                # f32 accumulator scratch
    tmp = tm * 2 * th * 4 + tm * th * w_isz           # f32 gate/up result + h
    return weights + xio + acc + tmp


def _choose_tiles(dim, hidden, w_dtype, x_dtype, tm_max=512):
    """Largest (tm, th) whose working set fits the per-core VMEM budget."""
    w_isz = jnp.dtype(w_dtype).itemsize
    x_isz = jnp.dtype(x_dtype).itemsize
    budget = int(_vmem_capacity_bytes() * 0.70)  # headroom for Mosaic scratch

    th_cap = _round_up(hidden, _LANE)
    th_candidates = [1024, 768, 512, 384, 256, 128]
    tm_candidates = sorted({min(c, tm_max) for c in
                            (tm_max, 384, 256, 128, 64, 32, 16, 8)}, reverse=True)

    for tm in tm_candidates:
        for th in th_candidates:
            th_eff = min(th, th_cap)
            if _working_set_bytes(tm, th_eff, dim, w_isz, x_isz) <= budget:
                return tm, th_eff
    return 8, min(128, th_cap)


def _weight_spec(shape, index_map, buffers):
    if buffers > 2:
        try:
            return pl.BlockSpec(shape, index_map,
                                pipeline_mode=pl.Buffered(buffers))
        except (TypeError, AttributeError):
            pass
    return pl.BlockSpec(shape, index_map)


def _mlp_kernel(x_ref, wgu_ref, wd_ref, o_ref, acc_ref):
    # x_ref:   (tm, dim)      token tile (resident across the hidden axis)
    # wgu_ref: (dim, 2*th)    fused [gate_k | up_k] weight slice (transposed)
    # wd_ref:  (th, dim)      down_proj weight slice (transposed)
    # o_ref:   (tm, dim)      output tile (resident across the hidden axis)
    # acc_ref: (tm, dim) f32  down-proj accumulator
    th = wd_ref.shape[0]
    k = pl.program_id(1)
    last = pl.num_programs(1) - 1

    @pl.when(k == 0)
    def _():
        acc_ref[...] = jnp.zeros_like(acc_ref)

    # Compute dtype = weight dtype (bf16 path hits full MXU throughput);
    # accumulation stays f32 via preferred_element_type.
    x = x_ref[...].astype(wgu_ref.dtype)
    gu = jnp.dot(x, wgu_ref[...], preferred_element_type=jnp.float32)
    gate = gu[:, :th]          # lane-aligned static split (th % 128 == 0)
    up = gu[:, th:]

    # SiLU(gate) * up in f32 (sigmoid goes to the EUP), cast back for down-proj.
    h = (gate * jax.nn.sigmoid(gate) * up).astype(wd_ref.dtype)
    down_partial = jnp.dot(h, wd_ref[...], preferred_element_type=jnp.float32)

    @pl.when(k != last)
    def _():
        acc_ref[...] += down_partial

    @pl.when(k == last)
    def _():
        # Fold the final partial product into the store: saves one full
        # (tm, dim) f32 accumulator read + write on the last iteration.
        o_ref[...] = (acc_ref[...] + down_partial).astype(o_ref.dtype)


def prepare_mlp_weights(wg, wu, wd, *, x_dtype=None, compute_dtype=None,
                        tm_max=512):
    """One-time weight preprocessing (outside the per-call path).

    wg, wu: (hidden, dim); wd: (dim, hidden)  -- PyTorch nn.Linear (out, in).
    Returns (wgu, wd_t, th, tm_cap):
      wgu   : (dim, 2*hp) gate/up weights, transposed, hidden zero-padded to a
              multiple of th, tile-interleaved so hidden tile k is a single
              contiguous [gate_k | up_k] slab (one DMA stream, one wide matmul).
      wd_t  : (hp, dim) down_proj weight, transposed, hidden zero-padded.
      th    : hidden tile size (static, multiple of 128).
      tm_cap: max token tile size (static).
    """
    hidden, dim = wg.shape
    assert wu.shape == (hidden, dim)
    assert wd.shape == (dim, hidden)

    if compute_dtype is not None:
        # e.g. bf16 on v5e: several-x MXU throughput; f32 accumulation kept.
        wg = wg.astype(compute_dtype)
        wu = wu.astype(compute_dtype)
        wd = wd.astype(compute_dtype)

    x_dtype = jnp.dtype(x_dtype) if x_dtype is not None else jnp.dtype(wg.dtype)
    tm_cap, th = _choose_tiles(dim, hidden, wg.dtype, x_dtype, tm_max=tm_max)

    hp = _round_up(hidden, th)          # padded hidden: weights always tiled
    nk = hp // th
    pad_h = hp - hidden

    wg_t = jnp.pad(wg.T, ((0, 0), (0, pad_h)))   # (dim, hp)
    wu_t = jnp.pad(wu.T, ((0, 0), (0, pad_h)))   # (dim, hp)
    wd_t = jnp.pad(wd.T, ((0, pad_h), (0, 0)))   # (hp, dim)

    # Interleave at tile granularity: columns of tile k = [gate_k | up_k].
    wgu = jnp.concatenate(
        [wg_t.reshape(dim, nk, th), wu_t.reshape(dim, nk, th)], axis=-1
    ).reshape(dim, 2 * hp)

    return wgu, wd_t, th, tm_cap


@functools.partial(jax.jit, static_argnames=("th", "tm_cap"))
def mlp_pallas(x, wgu, wd_t, *, th, tm_cap):
    """x: (..., dim). wgu/wd_t from prepare_mlp_weights."""
    orig_shape = x.shape
    dim = orig_shape[-1]
    hp = wd_t.shape[0]
    assert wgu.shape == (dim, 2 * hp)
    assert hp % th == 0

    x2d = x.reshape(-1, dim)
    m = x2d.shape[0]

    x_isz = jnp.dtype(x.dtype).itemsize
    w_isz = jnp.dtype(wgu.dtype).itemsize
    sub = _sublane(x.dtype)
    vmem_cap = _vmem_capacity_bytes()

    # Token tiling: as few zero-padded rows as possible, sublane-aligned tiles.
    n_tiles = max(1, _cdiv(m, tm_cap))
    if n_tiles == 1 and vmem_cap <= 64 * 2**20 and m >= 2 * max(sub, 128):
        # 64 MiB-VMEM parts (v7x) have 2 TensorCores; only the "parallel" axis
        # is sharded across them, so give each core a token tile when possible.
        n_tiles = 2
    tm = _round_up(_cdiv(m, n_tiles), sub)
    m_pad = n_tiles * tm
    if m_pad != m:
        x2d = jnp.pad(x2d, ((0, m_pad - m), (0, 0)))

    nk = hp // th
    grid = (n_tiles, nk)

    # VMEM budget / pipeline depth for the weight stream.
    ws = _working_set_bytes(tm, th, dim, w_isz, x_isz)
    extra_wbuf = (2 * dim * th + th * dim) * w_isz   # one more wgu+wd buffer
    wbufs = 3 if (nk >= 3 and ws + extra_wbuf <= int(vmem_cap * 0.75)) else 2
    vmem_limit = min(
        max(int(vmem_cap * 0.875), int((ws + (wbufs - 2) * extra_wbuf) * 1.2)),
        int(vmem_cap),
    )

    cost = pl.CostEstimate(
        flops=6 * m_pad * dim * hp,
        transcendentals=m_pad * hp,
        bytes_accessed=(
            2 * m_pad * dim * x_isz                    # x in + out
            + n_tiles * 3 * dim * hp * w_isz           # streamed weights
        ),
    )

    out = pl.pallas_call(
        _mlp_kernel,
        out_shape=jax.ShapeDtypeStruct((m_pad, dim), x.dtype),
        grid_spec=pltpu.PrefetchScalarGridSpec(
            num_scalar_prefetch=0,
            grid=grid,
            in_specs=[
                pl.BlockSpec((tm, dim), lambda i, k: (i, 0)),          # x tile
                _weight_spec((dim, 2 * th), lambda i, k: (0, k), wbufs),  # [Wg|Wu]^T
                _weight_spec((th, dim), lambda i, k: (k, 0), wbufs),      # Wd^T
            ],
            out_specs=pl.BlockSpec((tm, dim), lambda i, k: (i, 0)),
            scratch_shapes=[pltpu.VMEM((tm, dim), jnp.float32)],
        ),
        compiler_params=pltpu.CompilerParams(
            dimension_semantics=("parallel", "arbitrary"),
            vmem_limit_bytes=vmem_limit,
        ),
        cost_estimate=cost,
    )(x2d, wgu, wd_t)

    return out[:m].reshape(orig_shape)


def init_mlp_params(key, dim, hidden_dim, multiple_of, ffn_dim_multiplier=None,
                    dtype=jnp.float32):
    """Deterministic parameter init mirroring MLP.__init__ shape logic.

    Returns PyTorch nn.Linear-layout (out, in) weights and the final hidden_dim.
    """
    if ffn_dim_multiplier is not None:
        hidden_dim = int(ffn_dim_multiplier * hidden_dim)
    hidden_dim = multiple_of * ((hidden_dim + multiple_of - 1) // multiple_of)

    kg, ku, kd = jax.random.split(key, 3)
    wg = jax.random.uniform(kg, (hidden_dim, dim), dtype, -0.05, 0.05)
    wu = jax.random.uniform(ku, (hidden_dim, dim), dtype, -0.05, 0.05)
    wd = jax.random.uniform(kd, (dim, hidden_dim), dtype, -0.05, 0.05)
    return wg, wu, wd, hidden_dim


def mlp_reference(x, wg, wu, wd):
    gate = x @ wg.T
    up = x @ wu.T
    return (gate * jax.nn.sigmoid(gate) * up) @ wd.T


if __name__ == "__main__":
    key = jax.random.PRNGKey(0)
    kx, kp = jax.random.split(key)

    batch, seq, dim = 2, 8, 32
    hidden_dim_arg, multiple_of = 4 * dim, 32   # -> hidden_dim = 128

    wg, wu, wd, hidden_dim = init_mlp_params(
        kp, dim, hidden_dim_arg, multiple_of, ffn_dim_multiplier=None)

    x = jax.random.normal(kx, (batch, seq, dim), jnp.float32)
    ref = mlp_reference(x, wg, wu, wd)

    # f32 path
    wgu, wd_t, th, tm_cap = prepare_mlp_weights(wg, wu, wd, x_dtype=x.dtype)
    out = jax.block_until_ready(mlp_pallas(x, wgu, wd_t, th=th, tm_cap=tm_cap))
    assert out.shape == x.shape
    assert jnp.allclose(out, ref, atol=1e-4, rtol=1e-4), "f32 mismatch vs reference"

    # bf16 operand path (f32 accumulation inside the kernel) — looser tolerance.
    wgu16, wd16, th16, tmc16 = prepare_mlp_weights(
        wg, wu, wd, compute_dtype=jnp.bfloat16, x_dtype=jnp.bfloat16)
    out16 = jax.block_until_ready(
        mlp_pallas(x.astype(jnp.bfloat16), wgu16, wd16, th=th16, tm_cap=tmc16))
    assert out16.shape == x.shape
    assert jnp.allclose(out16.astype(jnp.float32), ref, atol=1e-2, rtol=1e-1), \
        "bf16 mismatch vs reference"

    print("KERNEL_OK")
</pallas_src>

<mosaic_0001>
module attributes {stable_mosaic.version = 11 : i64} {
  func.func @_mlp_kernel(%arg0: i32, %arg1: i32, %arg2: memref<16x32xf32, #tpu.memory_space<vmem>>, %arg3: memref<32x256xf32, #tpu.memory_space<vmem>>, %arg4: memref<128x32xf32, #tpu.memory_space<vmem>>, %arg5: memref<16x32xf32, #tpu.memory_space<vmem>>, %arg6: memref<16x32xf32, #tpu.memory_space<vmem>>) attributes {dimension_semantics = [#tpu.dimension_semantics<parallel>, #tpu.dimension_semantics<arbitrary>], iteration_bounds = array<i64: 1, 1>, scalar_prefetch = 0 : i64, scratch_operands = 1 : i64, tpu.core_type = #tpu.core_type<tc>, window_params = [{transform_indices = @transform_0, window_bounds = array<i64: 16, 32>}, {transform_indices = @transform_1, window_bounds = array<i64: 32, 256>}, {transform_indices = @transform_2, window_bounds = array<i64: 128, 32>}, {transform_indices = @transform_3, window_bounds = array<i64: 16, 32>}]} {
    %c0_i32 = arith.constant 0 : i32
    %0 = arith.cmpi eq, %arg1, %c0_i32 : i32
    %1 = arith.extui %0 : i1 to i32
    %c0_i32_0 = arith.constant 0 : i32
    %2 = arith.cmpi ne, %1, %c0_i32_0 : i32
    scf.if %2 {
      %cst_12 = arith.constant 0.000000e+00 : f32
      %23 = vector.broadcast %cst_12 : f32 to vector<16x32xf32>
      %c0_13 = arith.constant 0 : index
      %c0_14 = arith.constant 0 : index
      %24 = vector.load %arg6[%c0_13, %c0_14] : memref<16x32xf32, #tpu.memory_space<vmem>>, vector<16x32xf32>
      tpu.vector_store %arg6[%c0_13, %c0_14], %23 {strides = array<i32>} : memref<16x32xf32, #tpu.memory_space<vmem>>, vector<16x32xf32>,
    } else {
    }
    %c0 = arith.constant 0 : index
    %c0_1 = arith.constant 0 : index
    %3 = vector.load %arg2[%c0, %c0_1] : memref<16x32xf32, #tpu.memory_space<vmem>>, vector<16x32xf32>
    %c0_2 = arith.constant 0 : index
    %c0_3 = arith.constant 0 : index
    %4 = vector.load %arg3[%c0_2, %c0_3] : memref<32x256xf32, #tpu.memory_space<vmem>>, vector<32x256xf32>
    %cst = arith.constant dense<0.000000e+00> : vector<16x256xf32>
    %5 = tpu.matmul %3, %4, %cst {dimension_numbers = #tpu.dot_dimension_numbers<[1], [0], [0], [1], [0, 0, 1, 1], [], []>} : vector<16x32xf32>, vector<32x256xf32>, vector<16x256xf32> -> vector<16x256xf32>
    %6 = vector.extract_strided_slice %5 {offsets = [0, 0], sizes = [16, 128], strides = [1, 1]} : vector<16x256xf32> to vector<16x128xf32>
    %7 = vector.extract_strided_slice %5 {offsets = [0, 128], sizes = [16, 128], strides = [1, 1]} : vector<16x256xf32> to vector<16x128xf32>
    %8 = arith.negf %6 : vector<16x128xf32>
    %9 = math.exp %8 : vector<16x128xf32>
    %cst_4 = arith.constant 1.000000e+00 : f32
    %10 = vector.broadcast %cst_4 : f32 to vector<16x128xf32>
    %11 = arith.addf %10, %9 : vector<16x128xf32>
    %12 = arith.divf %10, %11 : vector<16x128xf32>
    %13 = arith.mulf %6, %12 : vector<16x128xf32>
    %14 = arith.mulf %13, %7 : vector<16x128xf32>
    %c0_5 = arith.constant 0 : index
    %c0_6 = arith.constant 0 : index
    %15 = vector.load %arg4[%c0_5, %c0_6] : memref<128x32xf32, #tpu.memory_space<vmem>>, vector<128x32xf32>
    %cst_7 = arith.constant dense<0.000000e+00> : vector<16x32xf32>
    %16 = tpu.matmul %14, %15, %cst_7 {dimension_numbers = #tpu.dot_dimension_numbers<[1], [0], [0], [1], [0, 0, 1, 1], [], []>} : vector<16x128xf32>, vector<128x32xf32>, vector<16x32xf32> -> vector<16x32xf32>
    %c0_i32_8 = arith.constant 0 : i32
    %17 = arith.cmpi ne, %arg1, %c0_i32_8 : i32
    %18 = arith.extui %17 : i1 to i32
    %c0_i32_9 = arith.constant 0 : i32
    %19 = arith.cmpi ne, %18, %c0_i32_9 : i32
    scf.if %19 {
      %c0_12 = arith.constant 0 : index
      %c0_13 = arith.constant 0 : index
      %23 = vector.load %arg6[%c0_12, %c0_13] : memref<16x32xf32, #tpu.memory_space<vmem>>, vector<16x32xf32>
      %24 = arith.addf %23, %16 : vector<16x32xf32>
      %c0_14 = arith.constant 0 : index
      %c0_15 = arith.constant 0 : index
      %25 = vector.load %arg6[%c0_14, %c0_15] : memref<16x32xf32, #tpu.memory_space<vmem>>, vector<16x32xf32>
      tpu.vector_store %arg6[%c0_14, %c0_15], %24 {strides = array<i32>} : memref<16x32xf32, #tpu.memory_space<vmem>>, vector<16x32xf32>,
    } else {
    }
    %c0_i32_10 = arith.constant 0 : i32
    %20 = arith.cmpi eq, %arg1, %c0_i32_10 : i32
    %21 = arith.extui %20 : i1 to i32
    %c0_i32_11 = arith.constant 0 : i32
    %22 = arith.cmpi ne, %21, %c0_i32_11 : i32
    scf.if %22 {
      %c0_12 = arith.constant 0 : index
      %c0_13 = arith.constant 0 : index
      %23 = vector.load %arg6[%c0_12, %c0_13] : memref<16x32xf32, #tpu.memory_space<vmem>>, vector<16x32xf32>
      %24 = arith.addf %23, %16 : vector<16x32xf32>
      %c0_14 = arith.constant 0 : index
      %c0_15 = arith.constant 0 : index
      %25 = vector.load %arg5[%c0_14, %c0_15] : memref<16x32xf32, #tpu.memory_space<vmem>>, vector<16x32xf32>
      tpu.vector_store %arg5[%c0_14, %c0_15], %24 {strides = array<i32>} : memref<16x32xf32, #tpu.memory_space<vmem>>, vector<16x32xf32>,
    } else {
    }
    return
  }
  func.func @transform_0(%arg0: i32, %arg1: i32) -> (i32, i32) {
    %c0_i32 = arith.constant 0 : i32
    %c0_i32_0 = arith.constant 0 : i32
    return %arg0, %c0_i32 : i32, i32
  }
  func.func @transform_1(%arg0: i32, %arg1: i32) -> (i32, i32) {
    %c0_i32 = arith.constant 0 : i32
    %c0_i32_0 = arith.constant 0 : i32
    return %c0_i32, %arg1 : i32, i32
  }
  func.func @transform_2(%arg0: i32, %arg1: i32) -> (i32, i32) {
    %c0_i32 = arith.constant 0 : i32
    %c0_i32_0 = arith.constant 0 : i32
    return %arg1, %c0_i32 : i32, i32
  }
  func.func @transform_3(%arg0: i32, %arg1: i32) -> (i32, i32) {
    %c0_i32 = arith.constant 0 : i32
    %c0_i32_0 = arith.constant 0 : i32
    return %arg0, %c0_i32 : i32, i32
  }
}

</mosaic_0001>

<bundles_post_ra>
// kernel: mlp_pallas.1
= control target key start
LH: loop header
LB: loop body
LE: loop exit
PB: predicated region body
PF: predicated region fallthrough
CT: control target
= control target key end

     0   :  { %vm19_vm0 = vcmask 261120   ;;  %v349_v4 = vmov 0.0   ;;  %s460_s0 = inlined_call_operand.vmem [shape: f32[16,32], index: 0, kind: input, shape index: {}]   ;;  %s461_s1 = inlined_call_operand.vmem [shape: f32[32,256], index: 1, kind: input, shape index: {}]   ;;  %s462_s2 = inlined_call_operand.vmem [shape: f32[128,32], index: 2, kind: input, shape index: {}]   ;;  %s463_s3 = inlined_call_operand.hbm [shape: f32[16,32], index: 3, kind: output, shape index: {}]  }
   0x1   :  { %v31_v0 = vld [vmem:[%s461_s1 + $0x38] sm:$0xff]  ;;  %v30_v1 = vld [vmem:[%s461_s1 + $0x30] sm:$0xff]  ;;  %v29_v2 = vld [vmem:[%s461_s1 + $0x28] sm:$0xff]  ;;  %20 = vst.msk [vmem:[#allocation2] sm:$0xff] %vm19_vm0, %v349_v4  ;;  %103 = vmatprep.mubr.f32.mxu0 %v349_v4 }
   0x2   :  { %63 = vmatprep.subr.mxu0 %v31_v0  ;;  %v28_v3 = vld [vmem:[%s461_s1 + $0x20] sm:$0xff]  ;;  %21 = vst.msk [vmem:[#allocation2 + $0x8] sm:$0xff] %vm19_vm0, %v349_v4  ;;  %v27_v5 = vld [vmem:[%s461_s1 + $0x18] sm:$0xff]  ;;  %v26_v6 = vld [vmem:[%s461_s1 + $0x10] sm:$0xff] }
   0x3   :  { %64 = vmatpush1.msra.mxu0 %v30_v1 }
   0x4   :  { %65 = vmatprep.subr.mxu0 %v29_v2 }
   0x5   :  { %8 = vsyncpa [#allocation4], 0  ;;  %66 = vmatpush1.msra.mxu0 %v28_v3  ;;  %v25_v7 = vld [vmem:[%s461_s1 + $0x8] sm:$0xff]  ;;  %v24_v8 = vld [vmem:[%s461_s1] sm:$0xff] }
   0x6   :  { %67 = vmatprep.subr.mxu0 %v27_v5  ;;  %v22_v9 = vld [vmem:[%s460_s0] sm:$0xff]  ;;  %v23_v10 = vld [vmem:[%s460_s0 + $0x8] sm:$0xff]  ;;  %v147_v11 = vld [vmem:[%s462_s2 + $0x78] sm:$0xff] }
   0x7   :  { %68 = vmatpush1.msra.mxu0 %v26_v6  ;;  %280 = vmatprep.subr.mxu1 %v147_v11  ;;  %v146_v12 = vld [vmem:[%s462_s2 + $0x70] sm:$0xff]  ;;  %v145_v13 = vld [vmem:[%s462_s2 + $0x68] sm:$0xff]  ;;  %v144_v14 = vld [vmem:[%s462_s2 + $0x60] sm:$0xff] }
   0x8   :  { %69 = vmatprep.subr.mxu0 %v25_v7  ;;  %281 = vmatpush3.msra.mxu1 %v147_v11  ;;  %v143_v15 = vld [vmem:[%s462_s2 + $0x58] sm:$0xff]  ;;  %v142_v16 = vld [vmem:[%s462_s2 + $0x50] sm:$0xff]  ;;  %v141_v17 = vld [vmem:[%s462_s2 + $0x48] sm:$0xff] }
   0x9   :  { %70 = vmatpush1.msra.mxu0 %v24_v8  ;;  %282 = vmatprep.subr.mxu1 %v146_v12  ;;  %v140_v18 = vld [vmem:[%s462_s2 + $0x40] sm:$0xff]  ;;  %v139_v19 = vld [vmem:[%s462_s2 + $0x38] sm:$0xff]  ;;  %v138_v20 = vld [vmem:[%s462_s2 + $0x30] sm:$0xff] }
   0xa   :  { %258 = vmatmul.mubr.msk.f32.vlgmr.msra.gmra.mxu0 %vm19_vm0, %v22_v9  ;;  %283 = vmatpush3.msra.mxu1 %v146_v12  ;;  %v137_v21 = vld [vmem:[%s462_s2 + $0x28] sm:$0xff]  ;;  %v136_v22 = vld [vmem:[%s462_s2 + $0x20] sm:$0xff]  ;;  %v135_v23 = vld [vmem:[%s462_s2 + $0x18] sm:$0xff] }
   0xb   :  { %109 = vmatprep.mubr.f32.mxu0 %v349_v4  ;;  %284 = vmatprep.subr.mxu1 %v145_v13  ;;  %v134_v24 = vld [vmem:[%s462_s2 + $0x10] sm:$0xff]  ;;  %v133_v25 = vld [vmem:[%s462_s2 + $0x8] sm:$0xff]  ;;  %v132_v26 = vld [vmem:[%s462_s2] sm:$0xff]  ;;  %s350_s2 = smov [#allocation3]  }
   0xc   :  { %285 = vmatpush3.msra.mxu1 %v145_v13  ;;  %v237_v43 = vld [vmem:[#allocation2 + $0x8] sm:$0xff]  ;;  %s247_s7 = sshll.u32 %s350_s2, 4  ;;  %v236_v45 = vld [vmem:[#allocation2] sm:$0xff]  ;;  %s248_s7 = int_to_ptr.vmem [resolvable:$true] %s247_s7 }
   0xd   :  { %286 = vmatprep.subr.mxu1 %v144_v14  ;;  %s327_s8 = scalar_lea.vmem %s248_s7, 256  ;;  %p332_p1 = scmp.lt.s32.totalorder %s248_s7, %s248_s7 }
   0xe   :  { %259 = vmatmul.mubr.msk.f32.gmra.mxu0 %vm19_vm0, %v23_v10  ;;  %287 = vmatpush3.msra.mxu1 %v144_v14  ;;  %p328_p0 = scmp.ne.s32.totalorder %s248_s7, %s327_s8  ;;  %p333_p2 = scmp.lt.s32.totalorder %s327_s8, %s327_s8 }
   0xf   :  { %288 = vmatprep.subr.mxu1 %v143_v15 }
  0x10   :  { %289 = vmatpush3.msra.mxu1 %v143_v15  ;;  %p334_p3 = por %p333_p2, %p332_p1 }
  0x11   :  { %290 = vmatprep.subr.mxu1 %v142_v16 }
  0x12   :  { %291 = vmatpush3.msra.mxu1 %v142_v16  ;;  %p335_p4 = pnand %p334_p3, %p328_p0 }
  0x13   :  { %292 = vmatprep.subr.mxu1 %v141_v17 }
  0x14   :  { %293 = vmatpush3.msra.mxu1 %v141_v17 }
  0x15   :  { %294 = vmatprep.subr.mxu1 %v140_v18 }
  0x16   :  { %295 = vmatpush3.msra.mxu1 %v140_v18 }
  0x17   :  { %296 = vmatprep.subr.mxu1 %v139_v19 }
  0x18   :  { %297 = vmatpush3.msra.mxu1 %v139_v19 }
  0x19   :  { %298 = vmatprep.subr.mxu1 %v138_v20 }
  0x1a   :  { %299 = vmatpush3.msra.mxu1 %v138_v20 }
  0x1b   :  { %300 = vmatprep.subr.mxu1 %v137_v21 }
  0x1c   :  { %301 = vmatpush3.msra.mxu1 %v137_v21 }
  0x1d   :  { %302 = vmatprep.subr.mxu1 %v136_v22 }
  0x1e   :  { %303 = vmatpush3.msra.mxu1 %v136_v22 }
  0x1f   :  { %304 = vmatprep.subr.mxu1 %v135_v23 }
  0x20   :  { %305 = vmatpush3.msra.mxu1 %v135_v23 }
  0x21   :  { %306 = vmatprep.subr.mxu1 %v134_v24 }
  0x22   :  { %307 = vmatpush3.msra.mxu1 %v134_v24 }
  0x23   :  { %308 = vmatprep.subr.mxu1 %v133_v25 }
  0x24   :  { %309 = vmatpush3.msra.mxu1 %v133_v25 }
  0x25   :  { %310 = vmatprep.subr.mxu1 %v132_v26 }
  0x26   :  { %311 = vmatpush3.msra.mxu1 %v132_v26 }
  0xca   :  { %v105_v27 = vpop.f32.mrf.mxu0 }
  0xcb   :  { %v260_v28 = vmul.f32 -1.442695, %v105_v27 }
  0xcc   :  { %v107_v29 = vpop.f32.mrf.mxu0 }
  0xcd   :  { %319 = vpow2.f32 %v260_v28 }
  0xce   :  { %v111_v30 = vpop.f32.mrf.mxu0 }
  0xcf   :  { %v261_v31 = vmul.f32 -1.442695, %v111_v30 }
  0xd0   :  { %v113_v41 = vpop.f32.mrf.mxu0 }
  0xd1   :  { %321 = vpow2.f32 %v261_v31 }
  0xda   :  { %v320_v32 = vpop.eup %319 }
  0xdb   :  { %v122_v33 = vadd.f32 1.0, %v320_v32 }
  0xdd   :  { %323 = vrcp.f32 %v122_v33 }
  0xde   :  { %v322_v34 = vpop.eup %321 }
  0xdf   :  { %v123_v35 = vadd.f32 1.0, %v322_v34 }
  0xe1   :  { %325 = vrcp.f32 %v123_v35 }
  0xea   :  { %v324_v36 = vpop.eup %323 }
  0xeb   :  { %v128_v37 = vmul.f32 %v324_v36, %v105_v27 }
  0xed   :  { %v130_v38 = vmul.f32 %v128_v37, %v107_v29 }
  0xee   :  { %v326_v39 = vpop.eup %325 }
  0xef   :  { %v129_v40 = vmul.f32 %v326_v39, %v111_v30  ;;  %312 = vmatprep.mubr.f32.mxu1 %v130_v38 }
  0xf1   :  { %v131_v42 = vmul.f32 %v129_v40, %v113_v41 }
  0xf3   :  { %313 = vmatmul.mubr.f32.vlgmr.msra.gmra.mxu1 %v131_v42 }
 0x1b3   :  { %v314_v44 = vpop.f32.mrf.mxu1 }
 0x1b4   :  { %v239_v46 = vadd.f32 %v314_v44, %v237_v43 }
 0x1b5   :  { %v214_v47 = vpop.f32.mrf.mxu1 }
 0x1b6   :  { %241 = vst.msk [vmem:[#allocation3 + $0x8] sm:$0xff] %vm19_vm0, %v239_v46  ;;  %v238_v48 = vadd.f32 %v236_v45, %v214_v47 }
 0x1b8   :  { %240 = vst.msk [vmem:[#allocation3] sm:$0xff] %vm19_vm0, %v238_v48 }
 0x1b9   :  { %338 = shalt.err (!%p335_p4)
}
 0x1ba   :  { %s351_s9 = smov 128   ;;  %s352_s0 = smov 8  }
 0x1bb   :  { %253 = dma.vmem_to_hbm [thread:$0]  %s248_s7, 256, %s463_s3, [#allocation4], %s351_s9, %s351_s9, %s352_s0  }
 0x1bc   :  { %347 = dma.done.wait [#allocation4], 256  }
 0x1bd   :  { %348 = vsyncadd [#allocation4], 4294967040 }
 0x1be   :  { %257 = vsyncpa [#allocation4], 1 }

</bundles_post_ra>
